<compile_context>
chip_gen: v7x
topology: tpu7x:2x2x1
jax: 0.10.0
libtpu: 0.0.40
codegen_flags: <defaults>
</compile_context>

<pallas_src>
import functools

import jax
import jax.numpy as jnp
from jax.experimental import pallas as pl
from jax.experimental.pallas import tpu as pltpu

_LANE = 128
_SUBLANE = 8


def _round_up(x, m):
    return ((x + m - 1) // m) * m


# ---------------------------------------------------------------------------
# Optional single-buffering of (constant-index) parameter blocks.
# ---------------------------------------------------------------------------

def _probe_copy_kernel(x_ref, o_ref):
    o_ref[...] = x_ref[...]


@functools.lru_cache(maxsize=None)
def _single_buffer_mode():
    """Return pl.Buffered(1) if this Pallas supports it for pallas_call inputs, else None."""
    if not hasattr(pl, "Buffered"):
        return None
    try:
        mode = pl.Buffered(buffer_count=1)
        x = jnp.arange(_SUBLANE * _LANE, dtype=jnp.float32).reshape(_SUBLANE, _LANE)
        y = pl.pallas_call(
            _probe_copy_kernel,
            out_shape=jax.ShapeDtypeStruct((_SUBLANE, _LANE), jnp.float32),
            grid=(1,),
            in_specs=[pl.BlockSpec((_SUBLANE, _LANE), lambda i: (0, 0), pipeline_mode=mode)],
            out_specs=pl.BlockSpec((_SUBLANE, _LANE), lambda i: (0, 0)),
        )(x)
        if bool(jnp.array_equal(y, x)):
            return mode
    except Exception:  # any construction/lowering issue -> default double buffering
        pass
    return None


def _param_specs(params, num_grid_axes):
    """Full-array BlockSpecs for parameters (constant index_map), single-buffered if possible."""
    mode = _single_buffer_mode()
    specs = []
    for p in params:
        nd = p.ndim
        if num_grid_axes == 1:
            idx_map = lambda i, nd=nd: (0,) * nd
        else:
            idx_map = lambda i, a, nd=nd: (0,) * nd
        if mode is not None:
            specs.append(pl.BlockSpec(p.shape, idx_map, pipeline_mode=mode))
        else:
            specs.append(pl.BlockSpec(p.shape, idx_map))
    return specs


# ---------------------------------------------------------------------------
# Tiling / compiler-param helpers.
# ---------------------------------------------------------------------------

def _choose_batch_tile(n_rows, max_width, extra_row_bytes=0, target_rows=1024):
    """Batch tile: a multiple of 128 (lane-dense transposed output) sized so live f32
    activations + per-row I/O stay within a ~24 MiB budget (safe on v7x's 64 MiB VMEM),
    split into >= 2 grid tiles whenever the batch allows (megacore)."""
    act_budget = 24 << 20
    per_row = 3 * max_width * 4 + extra_row_bytes
    cap = max(_LANE, (act_budget // max(per_row, 1)) // _LANE * _LANE)
    n128 = max(_LANE, _round_up(n_rows, _LANE))
    tb = min(target_rows, cap, n128)
    if tb >= n128 and n128 >= 2 * _LANE:
        tb = _round_up(n128 // 2, _LANE)   # >= 2 tiles so both TensorCores get work
    n_pad = _round_up(n128, tb)
    return tb, n_pad


def _compiler_params(dim_semantics, io_tile_bytes, param_bytes, act_bytes):
    # Double-buffered I/O blocks + (conservatively double-buffered) params + live activations.
    est = 2 * io_tile_bytes + 2 * param_bytes + act_bytes + (4 << 20)
    limit = int(min(max(est, 32 << 20), 48 << 20))   # <= 48 MiB: safe on v7x (64 MiB physical)
    return pltpu.CompilerParams(dimension_semantics=dim_semantics,
                                vmem_limit_bytes=limit)


# ---------------------------------------------------------------------------
# In-kernel building blocks (MXU fed in bf16, accumulation in f32).
# ---------------------------------------------------------------------------

def _linear(h, w_ref, b_ref):
    """h @ W + b with bf16 MXU inputs and f32 accumulation."""
    return (jnp.dot(h.astype(jnp.bfloat16), w_ref[...],
                    preferred_element_type=jnp.float32) + b_ref[...])


def _layer_norm(h, gamma_ref, beta_ref, eps=1e-5):
    """Two-pass LayerNorm in f32 (numerically stable, matches PyTorch)."""
    mu = jnp.mean(h, axis=-1, keepdims=True)
    c = h - mu
    var = jnp.mean(c * c, axis=-1, keepdims=True)
    return c * jax.lax.rsqrt(var + eps) * gamma_ref[...] + beta_ref[...]


def _mlp_kernel(x_ref, *refs, num_hidden, use_layer_norm, out_dim):
    """Fused MLP: [Linear (+LayerNorm) + ReLU] * num_hidden, then final Linear.

    The final result (tb, 128-padded) is transposed in-kernel so the HBM output is
    batch-as-lane (out_dim, tb): lane-dense, unmasked stores, no write inflation."""
    params = refs[:-1]
    out_ref = refs[-1]
    h = x_ref[...]                                        # bf16 input block
    idx = 0
    for _ in range(num_hidden):
        h = _linear(h, params[idx], params[idx + 1]); idx += 2
        if use_layer_norm:
            h = _layer_norm(h, params[idx], params[idx + 1]); idx += 2
        h = jnp.maximum(h, 0.0)
    h = _linear(h, params[idx], params[idx + 1])          # (tb, out_pad) final Linear
    out_ref[...] = jnp.transpose(h)[:out_dim, :].astype(out_ref.dtype)


def _qvalue_kernel(state_ref, act_ref, *refs, num_hidden, use_layer_norm, a_chunk, out_dim):
    """Q-value path: first Linear split into state / action parts.

    grid = (batch_tiles, action_chunks), both axes parallel.  state @ W_state is computed
    once per grid step and shared by the a_chunk actions of this step (statically unrolled
    loop); no scratch / cross-step state."""
    params = refs[:-1]
    out_ref = refs[-1]
    w_s, w_a, b1 = params[0], params[1], params[2]

    hs = jnp.dot(state_ref[...], w_s[...], preferred_element_type=jnp.float32)  # (tb, H1)
    acts = act_ref[...]                                   # (tb, a_chunk, Da) bf16, resident

    for a in range(a_chunk):
        act = acts[:, a, :]                               # (tb, Da)
        h = hs + jnp.dot(act, w_a[...], preferred_element_type=jnp.float32) + b1[...]
        idx = 3
        if num_hidden >= 1:
            if use_layer_norm:
                h = _layer_norm(h, params[idx], params[idx + 1]); idx += 2
            h = jnp.maximum(h, 0.0)
            for _ in range(num_hidden - 1):
                h = _linear(h, params[idx], params[idx + 1]); idx += 2
                if use_layer_norm:
                    h = _layer_norm(h, params[idx], params[idx + 1]); idx += 2
                h = jnp.maximum(h, 0.0)
            h = _linear(h, params[idx], params[idx + 1])  # (tb, out_pad) final Linear
        # Batch-as-lane output: (tb, out_pad) -> (out_pad, tb), keep the true out_dim rows.
        out_ref[a] = jnp.transpose(h)[:out_dim, :].astype(out_ref.dtype)


# ---------------------------------------------------------------------------
# Wrappers
# ---------------------------------------------------------------------------

def mlp_forward_pallas(x, params, *, num_hidden, use_layer_norm, out_dim, max_width,
                       flops_per_row, trans_per_row):
    """Run the fused MLP kernel over the (row-tiled) batch. x: (N, d_in)."""
    N, d_in = x.shape
    tb, Np = _choose_batch_tile(N, max_width, extra_row_bytes=2 * d_in)
    x = x.astype(jnp.bfloat16)                            # halve input HBM bytes
    if Np != N:
        x = jnp.pad(x, ((0, Np - N), (0, 0)))

    in_specs = [pl.BlockSpec((tb, d_in), lambda i: (i, 0))] + _param_specs(params, 1)
    param_bytes = sum(int(p.size) * p.dtype.itemsize for p in params)
    io_tile_bytes = tb * d_in * 2 + out_dim * tb * 4
    act_bytes = 3 * tb * max_width * 4
    cost = pl.CostEstimate(
        flops=int(flops_per_row * Np),
        transcendentals=int(trans_per_row * Np),
        bytes_accessed=int(Np * d_in * 2 + out_dim * Np * 4 + param_bytes),
    )
    out = pl.pallas_call(
        functools.partial(_mlp_kernel, num_hidden=num_hidden,
                          use_layer_norm=use_layer_norm, out_dim=out_dim),
        out_shape=jax.ShapeDtypeStruct((out_dim, Np), jnp.float32),
        grid=(Np // tb,),
        in_specs=in_specs,
        out_specs=pl.BlockSpec((out_dim, tb), lambda i: (0, i)),
        compiler_params=_compiler_params(("parallel",), io_tile_bytes, param_bytes, act_bytes),
        cost_estimate=cost,
    )(x, *params)
    return jnp.transpose(out[:, :N])                      # (N, out_dim)


def qvalues_pallas(state, actions, params, *, num_hidden, use_layer_norm, out_dim, max_width,
                   flops_state_per_row, flops_action_per_row, trans_per_row):
    """Q-values for (state, per-action) pairs without broadcasting state in HBM."""
    B, Ds = state.shape
    _, A, Da = actions.shape

    # Action chunking: up to 8 actions per grid step (block 2nd-to-last dim must be a
    # multiple of 8 or the full dim, so A<=8 -> one full-size chunk, else chunks of 8).
    if A <= _SUBLANE:
        a_chunk, A_pad = A, A
    else:
        a_chunk, A_pad = _SUBLANE, _round_up(A, _SUBLANE)
    n_chunks = A_pad // a_chunk

    tb, Bp = _choose_batch_tile(B, max_width, extra_row_bytes=2 * (Ds + a_chunk * Da))
    state = state.astype(jnp.bfloat16)
    actions = actions.astype(jnp.bfloat16)
    if Bp != B or A_pad != A:
        state = jnp.pad(state, ((0, Bp - B), (0, 0)))
        actions = jnp.pad(actions, ((0, Bp - B), (0, A_pad - A), (0, 0)))

    in_specs = ([pl.BlockSpec((tb, Ds), lambda i, a: (i, 0)),          # resident across chunks
                 pl.BlockSpec((tb, a_chunk, Da), lambda i, a: (i, a, 0))]
                + _param_specs(params, 2))

    param_bytes = sum(int(p.size) * p.dtype.itemsize for p in params)
    io_tile_bytes = tb * Ds * 2 + tb * a_chunk * Da * 2 + a_chunk * out_dim * tb * 4
    act_bytes = 4 * tb * max_width * 4
    cost = pl.CostEstimate(
        flops=int(Bp * n_chunks * flops_state_per_row + Bp * A_pad * flops_action_per_row),
        transcendentals=int(Bp * A_pad * trans_per_row),
        bytes_accessed=int(Bp * Ds * 2 + Bp * A_pad * Da * 2
                           + A_pad * out_dim * Bp * 4 + param_bytes),
    )
    out = pl.pallas_call(
        functools.partial(_qvalue_kernel, num_hidden=num_hidden,
                          use_layer_norm=use_layer_norm, a_chunk=a_chunk, out_dim=out_dim),
        out_shape=jax.ShapeDtypeStruct((A_pad, out_dim, Bp), jnp.float32),
        grid=(Bp // tb, n_chunks),
        in_specs=in_specs,
        out_specs=pl.BlockSpec((a_chunk, out_dim, tb), lambda i, a: (a, 0, i)),
        compiler_params=_compiler_params(("parallel", "parallel"),
                                         io_tile_bytes, param_bytes, act_bytes),
        cost_estimate=cost,
    )(state, actions, *params)
    # (A_pad, out_dim, Bp) -> (B, A, out_dim); the output tensor is tiny.
    return jnp.transpose(out[:A, :, :B], (2, 0, 1))


# ---------------------------------------------------------------------------
# Module
# ---------------------------------------------------------------------------

class VanillaQValueNetworkPallas:
    """JAX/Pallas re-implementation of pearl VanillaQValueNetwork forward semantics."""

    def __init__(self, state_dim, action_dim, hidden_dims, output_dim,
                 use_layer_norm=False, key=None):
        if key is None:
            key = jax.random.PRNGKey(0)
        self._state_dim = state_dim
        self._action_dim = action_dim
        self.output_dim = output_dim
        self.use_layer_norm = use_layer_norm
        dims = [state_dim + action_dim] + list(hidden_dims) + [output_dim]
        self.num_hidden = len(hidden_dims)
        self._out_pad = _round_up(max(output_dim, 1), _LANE)

        self.linears = []   # [(W bf16 (in,out), b f32 (1,out))]
        self.ln = []        # [(gamma f32 (1,out), beta f32 (1,out))]
        for i in range(len(dims) - 1):
            key, k_w, k_b = jax.random.split(key, 3)
            fan_in = dims[i]
            bound = 1.0 / (fan_in ** 0.5)
            # PyTorch nn.Linear default init: U(-1/sqrt(fan_in), 1/sqrt(fan_in)).
            # Stored transposed as (in, out); weights kept in bf16 (MXU-native).
            W = jax.random.uniform(k_w, (dims[i], dims[i + 1]), jnp.float32, -bound, bound)
            b = jax.random.uniform(k_b, (1, dims[i + 1]), jnp.float32, -bound, bound)
            self.linears.append((W.astype(jnp.bfloat16), b))
            if use_layer_norm and i < self.num_hidden:
                # nn.LayerNorm default: gamma=1, beta=0, eps=1e-5
                self.ln.append((jnp.ones((1, dims[i + 1]), jnp.float32),
                                jnp.zeros((1, dims[i + 1]), jnp.float32)))

        # Final layer padded to 128 columns ONLY in VMEM (clean MXU tile + in-kernel transpose);
        # the HBM output stays output_dim wide (no write inflation).
        W_f, b_f = self.linears[-1]
        W_pad = jnp.zeros((dims[-2], self._out_pad), jnp.bfloat16).at[:, :output_dim].set(W_f)
        b_pad = jnp.zeros((1, self._out_pad), jnp.float32).at[:, :output_dim].set(b_f)
        self._final_padded = (W_pad, b_pad)

        dims_mlp = dims[:-1] + [self._out_pad]      # widths the kernel actually computes
        self._max_width = max(dims_mlp)
        self._fwd_params = self._build_forward_params()
        self._qv_params = self._build_qvalue_params()

        # Cost-model numbers (per activation row) for pl.CostEstimate.
        self._flops_per_row = 2 * sum(dims_mlp[i] * dims_mlp[i + 1] for i in range(len(dims_mlp) - 1))
        self._trans_per_row = self.num_hidden if use_layer_norm else 0
        h1 = dims_mlp[1]
        rest = 2 * sum(dims_mlp[i] * dims_mlp[i + 1] for i in range(1, len(dims_mlp) - 1))
        self._flops_state_per_row = 2 * state_dim * h1
        self._flops_action_per_row = 2 * action_dim * h1 + rest

    # -- parameter flattening -------------------------------------------------
    def _build_forward_params(self):
        params = []
        for i in range(self.num_hidden):
            W, b = self.linears[i]
            params += [W, b]
            if self.use_layer_norm:
                params += list(self.ln[i])
        params += list(self._final_padded)
        return tuple(params)

    def _build_qvalue_params(self):
        sd = self._state_dim
        if self.num_hidden >= 1:
            W0, b0 = self.linears[0]
        else:
            W0, b0 = self._final_padded
        params = [W0[:sd], W0[sd:], b0]                 # split first Linear
        if self.use_layer_norm and self.num_hidden >= 1:
            params += list(self.ln[0])
        for i in range(1, self.num_hidden):
            W, b = self.linears[i]
            params += [W, b]
            if self.use_layer_norm:
                params += list(self.ln[i])
        if self.num_hidden >= 1:
            params += list(self._final_padded)
        return tuple(params)

    # -- public API -----------------------------------------------------------
    @property
    def state_dim(self):
        return self._state_dim

    @property
    def action_dim(self):
        return self._action_dim

    def forward(self, x):
        lead = x.shape[:-1]
        x2 = x.reshape((-1, x.shape[-1]))
        y = mlp_forward_pallas(
            x2, self._fwd_params, num_hidden=self.num_hidden,
            use_layer_norm=self.use_layer_norm, out_dim=self.output_dim,
            max_width=self._max_width, flops_per_row=self._flops_per_row,
            trans_per_row=self._trans_per_row)
        return y.reshape(lead + (self.output_dim,))

    def get_q_values(self, state_batch, action_batch, curr_available_actions_batch=None):
        assert state_batch.ndim == 2
        assert action_batch.ndim in (2, 3)
        ext_actions = action_batch if action_batch.ndim == 3 else action_batch[:, None, :]
        q = qvalues_pallas(
            state_batch, ext_actions, self._qv_params, num_hidden=self.num_hidden,
            use_layer_norm=self.use_layer_norm, out_dim=self.output_dim,
            max_width=self._max_width,
            flops_state_per_row=self._flops_state_per_row,
            flops_action_per_row=self._flops_action_per_row,
            trans_per_row=self._trans_per_row)
        # PyTorch semantics: forward(x).squeeze(-1); then another squeeze(-1) for 2-D actions.
        q = q[..., 0] if self.output_dim == 1 else q
        if action_batch.ndim == 2:
            q = q[..., 0] if q.shape[-1] == 1 else q
        return q


# ---------------------------------------------------------------------------
# Pure-jnp reference (emulates the kernel's bf16 weight / MXU input rounding).
# ---------------------------------------------------------------------------

def _mlp_reference(x, net):
    h = x.astype(jnp.float32)
    for i in range(net.num_hidden):
        W, b = net.linears[i]
        h = jnp.dot(h.astype(jnp.bfloat16), W, preferred_element_type=jnp.float32) + b
        if net.use_layer_norm:
            g, beta = net.ln[i]
            mu = jnp.mean(h, -1, keepdims=True)
            var = jnp.mean((h - mu) ** 2, -1, keepdims=True)
            h = (h - mu) / jnp.sqrt(var + 1e-5) * g + beta
        h = jnp.maximum(h, 0.0)
    W, b = net.linears[-1]
    return jnp.dot(h.astype(jnp.bfloat16), W, preferred_element_type=jnp.float32) + b


if __name__ == "__main__":
    state_dim, action_dim = 16, 8
    hidden_dims = [32, 32]
    output_dim = 1
    B, A = 2, 5

    key = jax.random.PRNGKey(0)
    k_net, k_x, k_s, k_a = jax.random.split(key, 4)

    net = VanillaQValueNetworkPallas(state_dim, action_dim, hidden_dims, output_dim,
                                     use_layer_norm=False, key=k_net)
    net_ln = VanillaQValueNetworkPallas(state_dim, action_dim, hidden_dims, output_dim,
                                        use_layer_norm=True, key=k_net)

    # ---- forward (plain MLP) ----
    x = jax.random.normal(k_x, (B, state_dim + action_dim), jnp.float32)
    y = net.forward(x)
    y_ref = _mlp_reference(x, net)
    assert y.shape == (B, output_dim)
    assert jnp.allclose(y, y_ref, atol=2e-3, rtol=2e-3), "forward mismatch"

    # multi-tile forward path (exercises >= 2 grid tiles of 128-multiple rows)
    x_big = jax.random.normal(k_x, (300, state_dim + action_dim), jnp.float32)
    y_big = net.forward(x_big)
    assert jnp.allclose(y_big, _mlp_reference(x_big, net), atol=2e-3, rtol=2e-3), \
        "multi-tile forward mismatch"

    # layer-norm variant
    y_ln = net_ln.forward(x)
    assert jnp.allclose(y_ln, _mlp_reference(x, net_ln), atol=2e-3, rtol=2e-3), \
        "layernorm forward mismatch"

    # ---- get_q_values (3-D and 2-D action batches) ----
    state_batch = jax.random.normal(k_s, (B, state_dim), jnp.float32)
    action_batch_3d = jax.random.normal(k_a, (B, A, action_dim), jnp.float32)
    x3 = jnp.concatenate(
        [jnp.broadcast_to(state_batch[:, None, :], (B, A, state_dim)), action_batch_3d],
        axis=-1).reshape(B * A, -1)

    q3 = net.get_q_values(state_batch, action_batch_3d)
    q3_ref = _mlp_reference(x3, net).reshape(B, A)
    assert q3.shape == (B, A)
    assert jnp.allclose(q3, q3_ref, atol=2e-3, rtol=2e-3), "get_q_values(3d) mismatch"

    q3_ln = net_ln.get_q_values(state_batch, action_batch_3d)
    q3_ln_ref = _mlp_reference(x3, net_ln).reshape(B, A)
    assert jnp.allclose(q3_ln, q3_ln_ref, atol=2e-3, rtol=2e-3), \
        "get_q_values(3d, layernorm) mismatch"

    action_batch_2d = action_batch_3d[:, 0, :]
    q2 = net.get_q_values(state_batch, action_batch_2d)
    assert q2.shape == (B,)
    assert jnp.allclose(q2, q3_ref[:, 0], atol=2e-3, rtol=2e-3), "get_q_values(2d) mismatch"

    # chunked-action path (A > 8 -> 8-action chunks + padded action axis)
    A12 = 12
    action_batch_12 = jax.random.normal(jax.random.PRNGKey(7), (B, A12, action_dim), jnp.float32)
    x12 = jnp.concatenate(
        [jnp.broadcast_to(state_batch[:, None, :], (B, A12, state_dim)), action_batch_12],
        axis=-1).reshape(B * A12, -1)
    q12 = net.get_q_values(state_batch, action_batch_12)
    assert q12.shape == (B, A12)
    assert jnp.allclose(q12, _mlp_reference(x12, net).reshape(B, A12), atol=2e-3, rtol=2e-3), \
        "get_q_values(chunked actions) mismatch"

    # multi-batch-tile q-value path
    Bbig, Asmall = 260, 3
    k_s2, k_a3 = jax.random.split(jax.random.PRNGKey(11))
    state_big = jax.random.normal(k_s2, (Bbig, state_dim), jnp.float32)
    actions_big = jax.random.normal(k_a3, (Bbig, Asmall, action_dim), jnp.float32)
    xb = jnp.concatenate(
        [jnp.broadcast_to(state_big[:, None, :], (Bbig, Asmall, state_dim)), actions_big],
        axis=-1).reshape(Bbig * Asmall, -1)
    qb = net.get_q_values(state_big, actions_big)
    assert qb.shape == (Bbig, Asmall)
    assert jnp.allclose(qb, _mlp_reference(xb, net).reshape(Bbig, Asmall),
                        atol=2e-3, rtol=2e-3), "get_q_values(multi batch tile) mismatch"

    # output_dim != 1 keeps PyTorch squeeze semantics (no squeeze of non-size-1 dims)
    net_multi = VanillaQValueNetworkPallas(state_dim, action_dim, hidden_dims, 3,
                                           use_layer_norm=False, key=k_net)
    q_multi = net_multi.get_q_values(state_batch, action_batch_3d)
    assert q_multi.shape == (B, A, 3)
    q_multi_ref = _mlp_reference(x3, net_multi).reshape(B, A, 3)
    assert jnp.allclose(q_multi, q_multi_ref, atol=2e-3, rtol=2e-3), \
        "get_q_values(output_dim=3) mismatch"

    jax.block_until_ready((y, y_big, y_ln, q3, q3_ln, q2, q12, qb, q_multi))
    print("KERNEL_OK")
</pallas_src>

<mosaic_0001>
module attributes {stable_mosaic.version = 11 : i64} {
  func.func @_probe_copy_kernel(%arg0: i32, %arg1: memref<8x128xf32, #tpu.memory_space<vmem>>, %arg2: memref<8x128xf32, #tpu.memory_space<vmem>>) attributes {dimension_semantics = [#tpu.dimension_semantics<arbitrary>], iteration_bounds = array<i64: 1>, scalar_prefetch = 0 : i64, scratch_operands = 0 : i64, tpu.core_type = #tpu.core_type<tc>, window_params = [{pipeline_mode = #tpu.pipeline_mode<synchronous>, transform_indices = @transform_0, window_bounds = array<i64: 8, 128>}, {pipeline_mode = #tpu.pipeline_mode<synchronous>, transform_indices = @transform_1, window_bounds = array<i64: 8, 128>}]} {
    %c0 = arith.constant 0 : index
    %c0_0 = arith.constant 0 : index
    %0 = vector.load %arg1[%c0, %c0_0] : memref<8x128xf32, #tpu.memory_space<vmem>>, vector<8x128xf32>
    %c0_1 = arith.constant 0 : index
    %c0_2 = arith.constant 0 : index
    %1 = vector.load %arg2[%c0_1, %c0_2] : memref<8x128xf32, #tpu.memory_space<vmem>>, vector<8x128xf32>
    tpu.vector_store %arg2[%c0_1, %c0_2], %0 {strides = array<i32>} : memref<8x128xf32, #tpu.memory_space<vmem>>, vector<8x128xf32>,
    return
  }
  func.func @transform_0(%arg0: i32) -> (i32, i32) {
    %c0_i32 = arith.constant 0 : i32
    %c0_i32_0 = arith.constant 0 : i32
    %c0_i32_1 = arith.constant 0 : i32
    return %c0_i32, %c0_i32_0 : i32, i32
  }
  func.func @transform_1(%arg0: i32) -> (i32, i32) {
    %c0_i32 = arith.constant 0 : i32
    %c0_i32_0 = arith.constant 0 : i32
    %c0_i32_1 = arith.constant 0 : i32
    return %c0_i32, %c0_i32_0 : i32, i32
  }
}

module attributes {stable_mosaic.version = 11 : i64} {
  func.func @_mlp_kernel(%arg0: i32, %arg1: memref<128x24xbf16, #tpu.memory_space<vmem>>, %arg2: memref<24x32xbf16, #tpu.memory_space<vmem>>, %arg3: memref<1x32xf32, #tpu.memory_space<vmem>>, %arg4: memref<32x32xbf16, #tpu.memory_space<vmem>>, %arg5: memref<1x32xf32, #tpu.memory_space<vmem>>, %arg6: memref<32x128xbf16, #tpu.memory_space<vmem>>, %arg7: memref<1x128xf32, #tpu.memory_space<vmem>>, %arg8: memref<1x128xf32, #tpu.memory_space<vmem>>) attributes {dimension_semantics = [#tpu.dimension_semantics<parallel>], iteration_bounds = array<i64: 1>, scalar_prefetch = 0 : i64, scratch_operands = 0 : i64, tpu.core_type = #tpu.core_type<tc>, window_params = [{transform_indices = @transform_0, window_bounds = array<i64: 128, 24>}, {pipeline_mode = #tpu.pipeline_mode<synchronous>, transform_indices = @transform_1, window_bounds = array<i64: 24, 32>}, {pipeline_mode = #tpu.pipeline_mode<synchronous>, transform_indices = @transform_2, window_bounds = array<i64: 1, 32>}, {pipeline_mode = #tpu.pipeline_mode<synchronous>, transform_indices = @transform_3, window_bounds = array<i64: 32, 32>}, {pipeline_mode = #tpu.pipeline_mode<synchronous>, transform_indices = @transform_4, window_bounds = array<i64: 1, 32>}, {pipeline_mode = #tpu.pipeline_mode<synchronous>, transform_indices = @transform_5, window_bounds = array<i64: 32, 128>}, {pipeline_mode = #tpu.pipeline_mode<synchronous>, transform_indices = @transform_6, window_bounds = array<i64: 1, 128>}, {transform_indices = @transform_7, window_bounds = array<i64: 1, 128>}]} {
    %c0 = arith.constant 0 : index
    %c0_0 = arith.constant 0 : index
    %0 = vector.load %arg1[%c0, %c0_0] : memref<128x24xbf16, #tpu.memory_space<vmem>>, vector<128x24xbf16>
    %c0_1 = arith.constant 0 : index
    %c0_2 = arith.constant 0 : index
    %1 = vector.load %arg2[%c0_1, %c0_2] : memref<24x32xbf16, #tpu.memory_space<vmem>>, vector<24x32xbf16>
    %cst = arith.constant dense<0.000000e+00> : vector<128x32xf32>
    %2 = tpu.matmul %0, %1, %cst {dimension_numbers = #tpu.dot_dimension_numbers<[1], [0], [0], [1], [0, 0, 1, 1], [], []>} : vector<128x24xbf16>, vector<24x32xbf16>, vector<128x32xf32> -> vector<128x32xf32>
    %c0_3 = arith.constant 0 : index
    %c0_4 = arith.constant 0 : index
    %3 = vector.load %arg3[%c0_3, %c0_4] : memref<1x32xf32, #tpu.memory_space<vmem>>, vector<1x32xf32>
    %4 = vector.broadcast %3 : vector<1x32xf32> to vector<128x32xf32>
    %5 = arith.addf %2, %4 : vector<128x32xf32>
    %cst_5 = arith.constant 0.000000e+00 : f32
    %6 = vector.broadcast %cst_5 : f32 to vector<128x32xf32>
    %7 = arith.maximumf %5, %6 : vector<128x32xf32>
    %8 = arith.truncf %7 : vector<128x32xf32> to vector<128x32xbf16>
    %c0_6 = arith.constant 0 : index
    %c0_7 = arith.constant 0 : index
    %9 = vector.load %arg4[%c0_6, %c0_7] : memref<32x32xbf16, #tpu.memory_space<vmem>>, vector<32x32xbf16>
    %cst_8 = arith.constant dense<0.000000e+00> : vector<128x32xf32>
    %10 = tpu.matmul %8, %9, %cst_8 {dimension_numbers = #tpu.dot_dimension_numbers<[1], [0], [0], [1], [0, 0, 1, 1], [], []>} : vector<128x32xbf16>, vector<32x32xbf16>, vector<128x32xf32> -> vector<128x32xf32>
    %c0_9 = arith.constant 0 : index
    %c0_10 = arith.constant 0 : index
    %11 = vector.load %arg5[%c0_9, %c0_10] : memref<1x32xf32, #tpu.memory_space<vmem>>, vector<1x32xf32>
    %12 = vector.broadcast %11 : vector<1x32xf32> to vector<128x32xf32>
    %13 = arith.addf %10, %12 : vector<128x32xf32>
    %cst_11 = arith.constant 0.000000e+00 : f32
    %14 = vector.broadcast %cst_11 : f32 to vector<128x32xf32>
    %15 = arith.maximumf %13, %14 : vector<128x32xf32>
    %16 = arith.truncf %15 : vector<128x32xf32> to vector<128x32xbf16>
    %c0_12 = arith.constant 0 : index
    %c0_13 = arith.constant 0 : index
    %17 = vector.load %arg6[%c0_12, %c0_13] : memref<32x128xbf16, #tpu.memory_space<vmem>>, vector<32x128xbf16>
    %cst_14 = arith.constant dense<0.000000e+00> : vector<128x128xf32>
    %18 = tpu.matmul %16, %17, %cst_14 {dimension_numbers = #tpu.dot_dimension_numbers<[1], [0], [0], [1], [0, 0, 1, 1], [], []>} : vector<128x32xbf16>, vector<32x128xbf16>, vector<128x128xf32> -> vector<128x128xf32>
    %c0_15 = arith.constant 0 : index
    %c0_16 = arith.constant 0 : index
    %19 = vector.load %arg7[%c0_15, %c0_16] : memref<1x128xf32, #tpu.memory_space<vmem>>, vector<1x128xf32>
    %20 = vector.broadcast %19 : vector<1x128xf32> to vector<128x128xf32>
    %21 = arith.addf %18, %20 : vector<128x128xf32>
    %22 = tpu.transpose %21, [1, 0] : vector<128x128xf32> -> vector<128x128xf32>
    %23 = vector.extract_strided_slice %22 {offsets = [0, 0], sizes = [1, 128], strides = [1, 1]} : vector<128x128xf32> to vector<1x128xf32>
    %c0_17 = arith.constant 0 : index
    %c0_18 = arith.constant 0 : index
    %24 = vector.load %arg8[%c0_17, %c0_18] : memref<1x128xf32, #tpu.memory_space<vmem>>, vector<1x128xf32>
    tpu.vector_store %arg8[%c0_17, %c0_18], %23 {strides = array<i32>} : memref<1x128xf32, #tpu.memory_space<vmem>>, vector<1x128xf32>,
    return
  }
  func.func @transform_0(%arg0: i32) -> (i32, i32) {
    %c0_i32 = arith.constant 0 : i32
    %c0_i32_0 = arith.constant 0 : i32
    return %arg0, %c0_i32 : i32, i32
  }
  func.func @transform_1(%arg0: i32) -> (i32, i32) {
    %c0_i32 = arith.constant 0 : i32
    %c0_i32_0 = arith.constant 0 : i32
    %c0_i32_1 = arith.constant 0 : i32
    return %c0_i32, %c0_i32_0 : i32, i32
  }
  func.func @transform_2(%arg0: i32) -> (i32, i32) {
    %c0_i32 = arith.constant 0 : i32
    %c0_i32_0 = arith.constant 0 : i32
    %c0_i32_1 = arith.constant 0 : i32
    return %c0_i32, %c0_i32_0 : i32, i32
  }
  func.func @transform_3(%arg0: i32) -> (i32, i32) {
    %c0_i32 = arith.constant 0 : i32
    %c0_i32_0 = arith.constant 0 : i32
    %c0_i32_1 = arith.constant 0 : i32
    return %c0_i32, %c0_i32_0 : i32, i32
  }
  func.func @transform_4(%arg0: i32) -> (i32, i32) {
    %c0_i32 = arith.constant 0 : i32
    %c0_i32_0 = arith.constant 0 : i32
    %c0_i32_1 = arith.constant 0 : i32
    return %c0_i32, %c0_i32_0 : i32, i32
  }
  func.func @transform_5(%arg0: i32) -> (i32, i32) {
    %c0_i32 = arith.constant 0 : i32
    %c0_i32_0 = arith.constant 0 : i32
    %c0_i32_1 = arith.constant 0 : i32
    return %c0_i32, %c0_i32_0 : i32, i32
  }
  func.func @transform_6(%arg0: i32) -> (i32, i32) {
    %c0_i32 = arith.constant 0 : i32
    %c0_i32_0 = arith.constant 0 : i32
    %c0_i32_1 = arith.constant 0 : i32
    return %c0_i32, %c0_i32_0 : i32, i32
  }
  func.func @transform_7(%arg0: i32) -> (i32, i32) {
    %c0_i32 = arith.constant 0 : i32
    %c0_i32_0 = arith.constant 0 : i32
    return %c0_i32, %arg0 : i32, i32
  }
}

</mosaic_0001>

<bundles_post_ra>
// kernel: tpu_custom_call.1
= control target key start
LH: loop header
LB: loop body
LE: loop exit
PB: predicated region body
PF: predicated region fallthrough
CT: control target
= control target key end

     0   :  { %6 = vsyncpa [#allocation3], 0  ;;  %s124_s0 = inlined_call_operand.hbm [shape: f32[8,128], index: 0, kind: input, shape index: {}]   ;;  %s125_s1 = inlined_call_operand.hbm [shape: f32[8,128], index: 1, kind: output, shape index: {}]  }
   0x1   :  { %7 = vsyncpa [#allocation4], 0  ;;  %s88_s6 = smov [#allocation2]   ;;  %s40_s10 = scalar_lea.hbm %s124_s0, 128 }
   0x2   :  { %s14_s7 = sshll.u32 %s88_s6, 4  ;;  %p41_p0 = scmp.ne.s32.totalorder %s124_s0, %s40_s10  ;;  %s15_s7 = int_to_ptr.vmem [resolvable:$true] %s14_s7 }
   0x3   :  { %p44_p1 = scmp.lt.u32.totalorder %s40_s10, %s124_s0 }
   0x5   :  { %p46_p2 = pnand %p44_p1, %p41_p0 }
   0x7   :  { %49 = shalt.err (!%p46_p2)
}
   0x8   :  { %s50_s15 = scalar_lea.vmem %s15_s7, 128  ;;  %p55_p4 = scmp.lt.s32.totalorder %s15_s7, %s15_s7 }
   0x9   :  { %p51_p3 = scmp.ne.s32.totalorder %s15_s7, %s50_s15  ;;  %p56_p5 = scmp.lt.s32.totalorder %s50_s15, %s50_s15 }
   0xb   :  { %p57_p6 = por %p56_p5, %p55_p4 }
   0xd   :  { %p58_p7 = pnand %p57_p6, %p51_p3 }
   0xf   :  { %61 = shalt.err (!%p58_p7)
}
  0x10   :  { %17 = dma.hbm_to_vmem [thread:$0]  %s124_s0, 128, %s15_s7, [#allocation3]  }
  0x11   :  { %84 = dma.done.wait [#allocation3], 128  }
  0x12   :  { %85 = vsyncadd [#allocation3], 4294967168  ;;  %s89_s18 = smov [#allocation5]   ;;  %v21_v0 = vld [vmem:[#allocation2] sm:$0xff] }
  0x13   :  { %s29_s19 = sshll.u32 %s89_s18, 4  ;;  %22 = vst [vmem:[#allocation5] sm:$0xff] %v21_v0  ;;  %s30_s19 = int_to_ptr.vmem [resolvable:$true] %s29_s19 }
  0x14   :  { %s62_s20 = scalar_lea.vmem %s30_s19, 128  ;;  %p67_p9 = scmp.lt.s32.totalorder %s30_s19, %s30_s19 }
  0x15   :  { %p63_p8 = scmp.ne.s32.totalorder %s30_s19, %s62_s20  ;;  %p68_p10 = scmp.lt.s32.totalorder %s62_s20, %s62_s20 }
  0x17   :  { %p69_p11 = por %p68_p10, %p67_p9 }
  0x19   :  { %p70_p12 = pnand %p69_p11, %p63_p8 }
  0x1b   :  { %73 = shalt.err (!%p70_p12)
}
  0x1c   :  { %s74_s23 = scalar_lea.hbm %s125_s1, 128 }
  0x1d   :  { %p75_p13 = scmp.ne.s32.totalorder %s125_s1, %s74_s23  ;;  %p78_p0 = scmp.lt.u32.totalorder %s74_s23, %s125_s1 }
  0x1f   :  { %p80_p1 = pnand %p78_p0, %p75_p13 }
  0x21   :  { %83 = shalt.err (!%p80_p1)
}
  0x22   :  { %32 = dma.vmem_to_hbm [thread:$0]  %s30_s19, 128, %s125_s1, [#allocation4]  }
  0x23   :  { %86 = dma.done.wait [#allocation4], 128  }
  0x24   :  { %87 = vsyncadd [#allocation4], 4294967168 }
  0x25   :  { %36 = vsyncpa [#allocation3], 1 }
  0x26   :  { %37 = vsyncpa [#allocation4], 1 }

// kernel: tpu_custom_call.1
= control target key start
LH: loop header
LB: loop body
LE: loop exit
PB: predicated region body
PF: predicated region fallthrough
CT: control target
= control target key end

     0   :  { %vm128_vm0 = vcmask 1043456   ;;  %vm103_vm1 = vcmask 195584   ;;  %s917_s0 = inlined_call_operand.vmem [shape: bf16[128,24], index: 0, kind: input, shape index: {}]   ;;  %s918_s1 = inlined_call_operand.vmem [shape: bf16[24,32], index: 1, kind: input, shape index: {}]   ;;  %s919_s2 = inlined_call_operand.vmem [shape: f32[1,32], index: 2, kind: input, shape index: {}]   ;;  %s920_s3 = inlined_call_operand.vmem [shape: bf16[32,32], index: 3, kind: input, shape index: {}]   ;;  %s921_s4 = inlined_call_operand.vmem [shape: f32[1,32], index: 4, kind: input, shape index: {}]   ;;  %s922_s5 = inlined_call_operand.vmem [shape: bf16[32,128], index: 5, kind: input, shape index: {}]   ;;  %s923_s6 = inlined_call_operand.vmem [shape: f32[1,128], index: 6, kind: input, shape index: {}]   ;;  %s924_s7 = inlined_call_operand.hbm [shape: f32[1,128], index: 7, kind: output, shape index: {}]  }
   0x1   :  { %v751_v0 = vld [vmem:[%s918_s1] sm:$0xff]   ;;  %v752_v1 = vld [vmem:[%s918_s1 + $0x8] ss:$0 sps:$4 sm:$0xff]   ;;  %v755_v5 = vld [vmem:[%s917_s0 + $0x10] sm:$0xff]  }
   0x2   :  { %684 = vmatprep.subr.bf16.mxu0 %v751_v0  ;;  %v753_v2 = vld [vmem:[%s917_s0] sm:$0xff]   ;;  %744 = vmatprep.subr.bf16.mxu1 %v751_v0  ;;  %v130_v3 = vsel %vm128_vm0, %v752_v1, 0  ;;  %v754_v4 = vld [vmem:[%s917_s0 + $0x8] sm:$0xff]   ;;  %v759_v8 = vld [vmem:[%s917_s0 + $0x30] sm:$0xff]  }
   0x3   :  { %685 = vmatpush3.bf16.msra.mxu0 %v751_v0  ;;  %746 = vmatpush3.bf16.msra.mxu1 %v751_v0  ;;  %v757_v6 = vld [vmem:[%s917_s0 + $0x20] sm:$0xff]   ;;  %v758_v7 = vld [vmem:[%s917_s0 + $0x28] sm:$0xff]  }
   0x4   :  { %748 = vmatprep.subr.msk.bf16.mxu0 %vm128_vm0, %v752_v1  ;;  %688 = vmatprep.mubr.msk.bf16.mxu0 %vm103_vm1, %v753_v2  ;;  %v761_v9 = vld [vmem:[%s920_s3] sm:$0xff]  }
   0x5   :  { %749 = vmatprep.subr.msk.bf16.mxu1 %vm128_vm0, %v752_v1  ;;  %696 = vmatprep.mubr.msk.bf16.mxu1 %vm103_vm1, %v757_v6 }
   0x7   :  { %687 = vmatpush3.bf16.msra.mxu0 %v130_v3  ;;  %747 = vmatpush3.bf16.msra.mxu1 %v130_v3 }
   0x8   :  { %704 = vmatprep.subr.bf16.mxu1 %v761_v9 }
   0xa   :  { %689 = vmatmul.mubr.msk.bf16.vlgmr.msra.gmra.mrb[0].mxu0 %vm103_vm1, %v754_v4  ;;  %697 = vmatmul.mubr.msk.bf16.vlgmr.msra.gmra.mrb[0].mxu1 %vm103_vm1, %v758_v7 }
   0xb   :  { %692 = vmatprep.mubr.msk.bf16.mxu0 %vm103_vm1, %v755_v5  ;;  %700 = vmatprep.mubr.msk.bf16.mxu1 %vm103_vm1, %v759_v8 }
   0xc   :  { %12 = vsyncpa [#allocation3], 0  ;;  %705 = vmatpush3.bf16.msra.mxu1 %v761_v9  ;;  %v756_v10 = vld [vmem:[%s917_s0 + $0x18] sm:$0xff]   ;;  %v762_v12 = vld [vmem:[%s920_s3 + $0x8] sm:$0xff]   ;;  %vm276_vm2 = vcmask 261120  }
   0xd   :  { %v760_v11 = vld [vmem:[%s917_s0 + $0x38] sm:$0xff]   ;;  %706 = vmatprep.subr.bf16.mxu1 %v762_v12  ;;  %v763_v13 = vld [vmem:[%s922_s5] sm:$0xff]   ;;  %v764_v7 = vld [vmem:[%s922_s5 + $0x8] sm:$0xff]  }
   0xe   :  { %724 = vmatprep.subr.bf16.mxu0 %v763_v13  ;;  %v613_v14 = vld [vmem:[%s919_s2] ss:$0 sm:$0xff] }
   0xf   :  { %725 = vmatpush3.bf16.msra.mxu0 %v763_v13  ;;  %v632_v8 = vld [vmem:[%s921_s4] ss:$0 sm:$0xff] }
  0x10   :  { %707 = vmatpush3.bf16.msra.mxu1 %v762_v12  ;;  %726 = vmatprep.subr.bf16.mxu0 %v764_v7 }
  0x12   :  { %693 = vmatmul.mubr.msk.bf16.gmra.mrb[4].mxu0 %vm103_vm1, %v756_v10  ;;  %701 = vmatmul.mubr.msk.bf16.gmra.mrb[4].mxu1 %vm103_vm1, %v760_v11 }
  0x13   :  { %727 = vmatpush3.bf16.msra.mxu0 %v764_v7 }
  0xdd   :  { %v690_v15 = vpop.f32.mrb[0].mxu0  ;;  %v698_v16 = vpop.f32.mrb[0].mxu1 }
  0xde   :  { %v175_v17 = vadd.f32 %v690_v15, %v613_v14  ;;  %v166_v18 = vpop.f32.mrb[1].mxu0  ;;  %v207_v19 = vadd.f32 %v698_v16, %v613_v14  ;;  %v198_v20 = vpop.f32.mrb[1].mxu1 }
  0xdf   :  { %v167_v21 = vadd.f32 %v613_v14, %v166_v18  ;;  %v691_v22 = vpop.f32.mrb[2].mxu0  ;;  %v199_v23 = vadd.f32 %v613_v14, %v198_v20  ;;  %v699_v24 = vpop.f32.mrb[2].mxu1 }
  0xe0   :  { %v178_v25 = vadd.f32 %v691_v22, %v613_v14  ;;  %v169_v26 = vpop.f32.mrb[3].mxu0  ;;  %v239_v27 = vmax.f32 %v207_v19, 0.0  ;;  %v210_v28 = vadd.f32 %v699_v24, %v613_v14  ;;  %v201_v29 = vpop.f32.mrb[3].mxu1  ;;  %v231_v33 = vmax.f32 %v175_v17, 0.0 }
  0xe1   :  { %v170_v30 = vadd.f32 %v613_v14, %v169_v26  ;;  %v237_v31 = vmax.f32 %v199_v23, 0.0  ;;  %v202_v32 = vadd.f32 %v613_v14, %v201_v29  ;;  %v229_v36 = vmax.f32 %v167_v21, 0.0 }
  0xe2   :  { %v232_v34 = vmax.f32 %v178_v25, 0.0  ;;  %v240_v35 = vmax.f32 %v210_v28, 0.0 }
  0xe3   :  { %v230_v37 = vmax.f32 %v170_v30, 0.0  ;;  %v238_v38 = vmax.f32 %v202_v32, 0.0 }
  0xe4   :  { %v246_v39 = vpack.c.bf16 %v232_v34, %v231_v33  ;;  %v250_v40 = vpack.c.bf16 %v240_v35, %v239_v27 }
  0xe5   :  { %v245_v41 = vpack.c.bf16 %v230_v37, %v229_v36  ;;  %v694_v42 = vpop.f32.mrb[4].mxu0  ;;  %v249_v43 = vpack.c.bf16 %v238_v38, %v237_v31  ;;  %v702_v44 = vpop.f32.mrb[4].mxu1 }
  0xe6   :  { %v191_v45 = vadd.f32 %v694_v42, %v613_v14  ;;  %v182_v46 = vpop.f32.mrb[5].mxu0  ;;  %v223_v47 = vadd.f32 %v702_v44, %v613_v14  ;;  %v214_v48 = vpop.f32.mrb[5].mxu1 }
  0xe7   :  { %v183_v49 = vadd.f32 %v613_v14, %v182_v46  ;;  %v695_v50 = vpop.f32.mrb[6].mxu0  ;;  %708 = vmatprep.mubr.msk.bf16.mxu1 %vm276_vm2, %v245_v41  ;;  %v215_v51 = vadd.f32 %v613_v14, %v214_v48  ;;  %v703_v52 = vpop.f32.mrb[6].mxu1 }
  0xe8   :  { %v235_v53 = vmax.f32 %v191_v45, 0.0  ;;  %v194_v54 = vadd.f32 %v695_v50, %v613_v14  ;;  %v185_v55 = vpop.f32.mrb[7].mxu0  ;;  %709 = vmatmul.mubr.msk.bf16.vlgmr.msra.gmra.mrb[8].mxu1 %vm276_vm2, %v246_v39  ;;  %v243_v56 = vmax.f32 %v223_v47, 0.0  ;;  %v226_v57 = vadd.f32 %v703_v52, %v613_v14  ;;  %v217_v58 = vpop.f32.mrb[7].mxu1 }
  0xe9   :  { %v233_v59 = vmax.f32 %v183_v49, 0.0  ;;  %v186_v60 = vadd.f32 %v613_v14, %v185_v55  ;;  %v241_v61 = vmax.f32 %v215_v51, 0.0  ;;  %v218_v62 = vadd.f32 %v613_v14, %v217_v58 }
  0xea   :  { %v236_v63 = vmax.f32 %v194_v54, 0.0  ;;  %v244_v0 = vmax.f32 %v226_v57, 0.0 }
  0xeb   :  { %v234_v1 = vmax.f32 %v186_v60, 0.0  ;;  %v242_v2 = vmax.f32 %v218_v62, 0.0 }
  0xec   :  { %v248_v3 = vpack.c.bf16 %v236_v63, %v235_v53  ;;  %v252_v4 = vpack.c.bf16 %v244_v0, %v243_v56 }
  0xed   :  { %v247_v5 = vpack.c.bf16 %v234_v1, %v233_v59  ;;  %v251_v6 = vpack.c.bf16 %v242_v2, %v241_v61  ;;  %v643_v1 = vld [vmem:[%s923_s6] ss:$0 sm:$0xff]  ;;  %s789_s6 = smov [#allocation2]  }
  0xee   :  { %s605_s29 = sshll.u32 %s789_s6, 4  ;;  %s606_s29 = int_to_ptr.vmem [resolvable:$true] %s605_s29 }
  0xef   :  { %712 = vmatprep.mubr.msk.bf16.mxu1 %vm276_vm2, %v247_v5  ;;  %s765_s30 = scalar_lea.vmem %s606_s29, 16  ;;  %s769_s8 = scalar_lea.vmem %s606_s29, 32 }
  0xf0   :  { %713 = vmatmul.mubr.msk.bf16.gmra.mrb[12].mxu1 %vm276_vm2, %v248_v3  ;;  %p766_p0 = scmp.ne.s32.totalorder %s606_s29, %s765_s30  ;;  %p770_p1 = scmp.lt.s32.totalorder %s606_s29, %s606_s29 }
  0xf1   :  { %716 = vmatprep.mubr.msk.bf16.mxu1 %vm276_vm2, %v249_v43  ;;  %p771_p2 = scmp.lt.s32.totalorder %s769_s8, %s765_s30 }
  0xf3   :  { %p772_p3 = por %p771_p2, %p770_p1 }
  0xf5   :  { %p773_p4 = pnand %p772_p3, %p766_p0 }
  0xf8   :  { %717 = vmatmul.mubr.msk.bf16.gmra.mrb[16].mxu1 %vm276_vm2, %v250_v40 }
  0xf9   :  { %720 = vmatprep.mubr.msk.bf16.mxu1 %vm276_vm2, %v251_v6 }
 0x100   :  { %721 = vmatmul.mubr.msk.bf16.gmra.mrb[20].mxu1 %vm276_vm2, %v252_v4 }
 0x1bb   :  { %v710_v9 = vpop.f32.mrb[8].mxu1 }
 0x1bc   :  { %v344_v10 = vadd.f32 %v710_v9, %v632_v8  ;;  %v335_v11 = vpop.f32.mrb[9].mxu1 }
 0x1bd   :  { %v336_v12 = vadd.f32 %v632_v8, %v335_v11  ;;  %v711_v13 = vpop.f32.mrb[10].mxu1 }
 0x1be   :  { %v347_v14 = vadd.f32 %v711_v13, %v632_v8  ;;  %v338_v15 = vpop.f32.mrb[11].mxu1  ;;  %v400_v17 = vmax.f32 %v344_v10, 0.0 }
 0x1bf   :  { %v339_v16 = vadd.f32 %v632_v8, %v338_v15  ;;  %v398_v19 = vmax.f32 %v336_v12, 0.0 }
 0x1c0   :  { %v401_v18 = vmax.f32 %v347_v14, 0.0 }
 0x1c1   :  { %v399_v20 = vmax.f32 %v339_v16, 0.0 }
 0x1c2   :  { %v415_v21 = vpack.c.bf16 %v401_v18, %v400_v17 }
 0x1c3   :  { %v414_v22 = vpack.c.bf16 %v399_v20, %v398_v19  ;;  %v714_v23 = vpop.f32.mrb[12].mxu1 }
 0x1c4   :  { %v360_v24 = vadd.f32 %v714_v23, %v632_v8  ;;  %v351_v25 = vpop.f32.mrb[13].mxu1 }
 0x1c5   :  { %v352_v26 = vadd.f32 %v632_v8, %v351_v25  ;;  %v715_v27 = vpop.f32.mrb[14].mxu1  ;;  %728 = vmatprep.mubr.msk.bf16.mxu0 %vm276_vm2, %v414_v22 }
 0x1c6   :  { %v404_v28 = vmax.f32 %v360_v24, 0.0  ;;  %v363_v29 = vadd.f32 %v715_v27, %v632_v8  ;;  %v354_v30 = vpop.f32.mrb[15].mxu1  ;;  %729 = vmatmul.mubr.msk.bf16.vlgmr.msra.gmra.mrb[8].mxu0 %vm276_vm2, %v415_v21 }
 0x1c7   :  { %v402_v31 = vmax.f32 %v352_v26, 0.0  ;;  %v355_v32 = vadd.f32 %v632_v8, %v354_v30 }
 0x1c8   :  { %v405_v33 = vmax.f32 %v363_v29, 0.0 }
 0x1c9   :  { %v403_v34 = vmax.f32 %v355_v32, 0.0 }
 0x1ca   :  { %v417_v35 = vpack.c.bf16 %v405_v33, %v404_v28 }
 0x1cb   :  { %v416_v36 = vpack.c.bf16 %v403_v34, %v402_v31  ;;  %v718_v37 = vpop.f32.mrb[16].mxu1 }
 0x1cc   :  { %v376_v38 = vadd.f32 %v718_v37, %v632_v8  ;;  %v367_v39 = vpop.f32.mrb[17].mxu1 }
 0x1cd   :  { %732 = vmatprep.mubr.msk.bf16.mxu0 %vm276_vm2, %v416_v36  ;;  %v368_v40 = vadd.f32 %v632_v8, %v367_v39  ;;  %v719_v41 = vpop.f32.mrb[18].mxu1 }
 0x1ce   :  { %733 = vmatmul.mubr.msk.bf16.gmra.mrb[12].mxu0 %vm276_vm2, %v417_v35  ;;  %v408_v42 = vmax.f32 %v376_v38, 0.0  ;;  %v379_v43 = vadd.f32 %v719_v41, %v632_v8  ;;  %v370_v44 = vpop.f32.mrb[19].mxu1 }
 0x1cf   :  { %v406_v45 = vmax.f32 %v368_v40, 0.0  ;;  %v371_v46 = vadd.f32 %v632_v8, %v370_v44 }
 0x1d0   :  { %v409_v47 = vmax.f32 %v379_v43, 0.0 }
 0x1d1   :  { %v407_v48 = vmax.f32 %v371_v46, 0.0 }
 0x1d2   :  { %v419_v49 = vpack.c.bf16 %v409_v47, %v408_v42 }
 0x1d3   :  { %v418_v50 = vpack.c.bf16 %v407_v48, %v406_v45  ;;  %v722_v51 = vpop.f32.mrb[20].mxu1 }
 0x1d4   :  { %v392_v52 = vadd.f32 %v722_v51, %v632_v8  ;;  %v383_v53 = vpop.f32.mrb[21].mxu1 }
 0x1d5   :  { %736 = vmatprep.mubr.msk.bf16.mxu0 %vm276_vm2, %v418_v50  ;;  %v384_v54 = vadd.f32 %v632_v8, %v383_v53  ;;  %v723_v55 = vpop.f32.mrb[22].mxu1 }
 0x1d6   :  { %737 = vmatmul.mubr.msk.bf16.gmra.mrb[16].mxu0 %vm276_vm2, %v419_v49  ;;  %v412_v56 = vmax.f32 %v392_v52, 0.0  ;;  %v395_v57 = vadd.f32 %v723_v55, %v632_v8  ;;  %v386_v58 = vpop.f32.mrb[23].mxu1 }
 0x1d7   :  { %v410_v59 = vmax.f32 %v384_v54, 0.0  ;;  %v387_v60 = vadd.f32 %v632_v8, %v386_v58 }
 0x1d8   :  { %v413_v61 = vmax.f32 %v395_v57, 0.0 }
 0x1d9   :  { %v411_v62 = vmax.f32 %v387_v60, 0.0 }
 0x1da   :  { %v421_v63 = vpack.c.bf16 %v413_v61, %v412_v56 }
 0x1db   :  { %v420_v0 = vpack.c.bf16 %v411_v62, %v410_v59 }
 0x1dd   :  { %740 = vmatprep.mubr.msk.bf16.mxu0 %vm276_vm2, %v420_v0 }
 0x1de   :  { %741 = vmatmul.mubr.msk.bf16.gmra.mrb[20].mxu0 %vm276_vm2, %v421_v63 }
 0x299   :  { %v730_v2 = vpop.f32.mrb[8].mxu0 }
 0x29a   :  { %v503_v3 = vpop.f32.mrb[9].mxu0  ;;  %v512_v10 = vadd.f32 %v730_v2, %v643_v1 }
 0x29b   :  { %v731_v4 = vpop.f32.mrb[10].mxu0  ;;  %v504_v5 = vadd.f32 %v643_v1, %v503_v3 }
 0x29c   :  { %v506_v6 = vpop.f32.mrb[11].mxu0  ;;  %v515_v13 = vadd.f32 %v731_v4, %v643_v1 }
 0x29d   :  { %566 = vxpose.xlu0.b32.start [1/16] (narrow) %v504_v5, 8  ;;  %v507_v7 = vadd.f32 %v643_v1, %v506_v6 }
 0x2a1   :  { %v734_v8 = vpop.f32.mrb[12].mxu0  ;;  %567 = vxpose.xlu0.b32.cont [2/16] (narrow) %v507_v7, 8 }
 0x2a2   :  { %v519_v9 = vpop.f32.mrb[13].mxu0  ;;  %v528_v22 = vadd.f32 %v734_v8, %v643_v1 }
 0x2a3   :  { %v735_v11 = vpop.f32.mrb[14].mxu0  ;;  %v520_v16 = vadd.f32 %v643_v1, %v519_v9 }
 0x2a4   :  { %v522_v12 = vpop.f32.mrb[15].mxu0  ;;  %v531_v25 = vadd.f32 %v735_v11, %v643_v1 }
 0x2a5   :  { %568 = vxpose.xlu0.b32.cont [3/16] (narrow) %v512_v10, 8  ;;  %v523_v19 = vadd.f32 %v643_v1, %v522_v12 }
 0x2a9   :  { %569 = vxpose.xlu0.b32.cont [4/16] (narrow) %v515_v13, 8  ;;  %v738_v14 = vpop.f32.mrb[16].mxu0 }
 0x2aa   :  { %v535_v15 = vpop.f32.mrb[17].mxu0  ;;  %v544_v28 = vadd.f32 %v738_v14, %v643_v1 }
 0x2ab   :  { %v739_v17 = vpop.f32.mrb[18].mxu0  ;;  %v536_v26 = vadd.f32 %v643_v1, %v535_v15 }
 0x2ac   :  { %v538_v18 = vpop.f32.mrb[19].mxu0  ;;  %v547_v29 = vadd.f32 %v739_v17, %v643_v1 }
 0x2ad   :  { %570 = vxpose.xlu0.b32.cont [5/16] (narrow) %v520_v16, 8  ;;  %v539_v27 = vadd.f32 %v643_v1, %v538_v18 }
 0x2b1   :  { %571 = vxpose.xlu0.b32.cont [6/16] (narrow) %v523_v19, 8  ;;  %v742_v20 = vpop.f32.mrb[20].mxu0 }
 0x2b2   :  { %v551_v21 = vpop.f32.mrb[21].mxu0  ;;  %v560_v32 = vadd.f32 %v742_v20, %v643_v1 }
 0x2b3   :  { %v743_v23 = vpop.f32.mrb[22].mxu0  ;;  %v552_v30 = vadd.f32 %v643_v1, %v551_v21 }
 0x2b4   :  { %v554_v24 = vpop.f32.mrb[23].mxu0  ;;  %v563_v33 = vadd.f32 %v743_v23, %v643_v1 }
 0x2b5   :  { %572 = vxpose.xlu0.b32.cont [7/16] (narrow) %v528_v22, 8  ;;  %v555_v31 = vadd.f32 %v643_v1, %v554_v24 }
 0x2b9   :  { %573 = vxpose.xlu0.b32.cont [8/16] (narrow) %v531_v25, 8 }
 0x2bd   :  { %574 = vxpose.xlu0.b32.cont [9/16] (narrow) %v536_v26, 8 }
 0x2c1   :  { %575 = vxpose.xlu0.b32.cont [10/16] (narrow) %v539_v27, 8 }
 0x2c5   :  { %576 = vxpose.xlu0.b32.cont [11/16] (narrow) %v544_v28, 8 }
 0x2c9   :  { %577 = vxpose.xlu0.b32.cont [12/16] (narrow) %v547_v29, 8 }
 0x2cd   :  { %578 = vxpose.xlu0.b32.cont [13/16] (narrow) %v552_v30, 8 }
 0x2d1   :  { %579 = vxpose.xlu0.b32.cont [14/16] (narrow) %v555_v31, 8 }
 0x2d5   :  { %580 = vxpose.xlu0.b32.cont [15/16] (narrow) %v560_v32, 8 }
 0x2d9   :  { %581 = vxpose.xlu0.b32.end [16/16] (narrow) %v563_v33, 8 }
 0x31d   :  { %v582_v34 = vpop.trf.xlu0 }
 0x31e   :  { %598 = vst [vmem:[#allocation2] sm:$0x1] %v582_v34 }
 0x31f   :  { %776 = shalt.err (!%p773_p4)
}
 0x320   :  { %s777_s1 = scalar_lea.hbm %s924_s7, 16 }
 0x321   :  { %p778_p5 = scmp.ne.s32.totalorder %s924_s7, %s777_s1  ;;  %p781_p6 = scmp.lt.u32.totalorder %s777_s1, %s924_s7 }
 0x323   :  { %p783_p7 = pnand %p781_p6, %p778_p5 }
 0x325   :  { %786 = shalt.err (!%p783_p7)
}
 0x326   :  { %608 = dma.vmem_to_hbm [thread:$0]  %s606_s29, 16, %s924_s7, [#allocation3]  }
 0x327   :  { %787 = dma.done.wait [#allocation3], 16  }
 0x328   :  { %788 = vsyncadd [#allocation3], 4294967280 }
 0x329   :  { %612 = vsyncpa [#allocation3], 1 }

</bundles_post_ra>
